<compile_context>
chip_gen: v7x
topology: tpu7x:2x2x1
jax: 0.10.0
libtpu: 0.0.40
codegen_flags: <defaults>
</compile_context>

<pallas_src>
import jax
import jax.numpy as jnp
from jax import lax
from jax.experimental import pallas as pl
from jax.experimental.pallas import tpu as pltpu


def bahdanau_attention_kernel(xh_ref, w_ref, b_ref, va_ref, x_ref,
                              ctx_ref, acc_ref):
    """One grid step over the K = F + H reduction of the fused projection.

    xh_ref : [N, tk]  bf16  block of [x | h]           (streamed over K)
    w_ref  : [tk, H]  bf16  block of [Wa^T ; Ua^T]     (streamed over K)
    b_ref  : [1, H]   f32   folded bias ba + bu        (resident)
    va_ref : [1, H]   f32   v_a weight row             (resident)
    x_ref  : [N, F]   bf16  image vectors for context  (resident)
    ctx_ref: [1, F]   f32   output context             (resident)
    acc_ref: [N, H]   f32   projection accumulator (VMEM scratch)
    """
    k = pl.program_id(0)

    @pl.when(k == 0)
    def _init():
        acc_ref[...] = jnp.zeros_like(acc_ref)

    # Fused projection: accumulate x @ Wa^T + h @ Ua^T over K blocks (MXU).
    acc_ref[...] += jnp.dot(xh_ref[...], w_ref[...],
                            preferred_element_type=jnp.float32)

    @pl.when(k == pl.num_programs(0) - 1)
    def _finalize():
        # atten_tan = tanh(atten_1 + atten_2)                      [N, H] f32
        t = jnp.tanh(acc_ref[...] + b_ref[...])

        # atten_score, lane-dense: va . t^T -> [1, N]
        # (bv is dropped: a constant shift cancels inside the softmax.)
        s = lax.dot_general(va_ref[...], t,
                            (((1,), (1,)), ((), ())),
                            preferred_element_type=jnp.float32)

        # softmax over the N axis, kept along lanes.
        m = jnp.max(s, axis=-1, keepdims=True)
        e = jnp.exp(s - m)                                          # [1, N]
        inv = pl.reciprocal(jnp.sum(e, axis=-1, keepdims=True), approx=True)

        # context = softmax(s) @ x, normalized AFTER the contraction.
        ctx = jnp.dot(e.astype(x_ref.dtype), x_ref[...],
                      preferred_element_type=jnp.float32)           # [1, F]
        ctx_ref[...] = (ctx * inv).astype(ctx_ref.dtype)


def _pick_tk(K):
    for cand in (512, 256, 128):
        if K % cand == 0:
            return cand
    return K


def bahdanau_attention(x, h, params, *, tk=None):
    """x: [N, F] image vectors, h: [N, H] LSTM hidden state. Returns [1, F]."""
    N, F = x.shape
    Nh, H = h.shape
    assert N == Nh
    wa, ba, ua, bu, va, bv = params      # PyTorch layout: w [out, in], b [out]
    del bv  # constant shift of every score: cancels in the softmax

    # --- host-side repacking (plain JAX, outside the kernel) ---
    xh = jnp.concatenate([x, h], axis=1).astype(jnp.bfloat16)            # [N, K]
    w_fused = jnp.concatenate([wa.T, ua.T], axis=0).astype(jnp.bfloat16)  # [K, H]
    b_fused = (ba + bu).reshape(1, H).astype(jnp.float32)                # [1, H]
    va_row = va.reshape(1, H).astype(jnp.float32)                        # [1, H]
    x_bf16 = x.astype(jnp.bfloat16)                                      # [N, F]

    K = F + H
    tk = _pick_tk(K) if tk is None else tk
    assert K % tk == 0
    nk = K // tk

    grid_spec = pltpu.PrefetchScalarGridSpec(
        num_scalar_prefetch=0,
        grid=(nk,),
        in_specs=[
            pl.BlockSpec((N, tk), lambda k: (0, k)),   # [x | h] block
            pl.BlockSpec((tk, H), lambda k: (k, 0)),   # fused weight block
            pl.BlockSpec((1, H), lambda k: (0, 0)),    # folded bias (resident)
            pl.BlockSpec((1, H), lambda k: (0, 0)),    # v_a row (resident)
            pl.BlockSpec((N, F), lambda k: (0, 0)),    # x for context (resident)
        ],
        out_specs=pl.BlockSpec((1, F), lambda k: (0, 0)),
        scratch_shapes=[pltpu.VMEM((N, H), jnp.float32)],
    )

    return pl.pallas_call(
        bahdanau_attention_kernel,
        out_shape=jax.ShapeDtypeStruct((1, F), jnp.float32),
        grid_spec=grid_spec,
        compiler_params=pltpu.CompilerParams(
            dimension_semantics=("arbitrary",),   # K is a reduction axis
        ),
    )(xh, w_fused, b_fused, va_row, x_bf16)


def init_params(key, cnn_feature_size, hidden_size, output_size=1):
    """nn.Linear default init U[-1/sqrt(in), 1/sqrt(in)], PyTorch [out, in] layout."""
    ks = jax.random.split(key, 6)

    def linear(kw, kb, in_f, out_f):
        bound = 1.0 / (in_f ** 0.5)
        w = jax.random.uniform(kw, (out_f, in_f), jnp.float32, -bound, bound)
        b = jax.random.uniform(kb, (out_f,), jnp.float32, -bound, bound)
        return w, b

    wa, ba = linear(ks[0], ks[1], cnn_feature_size, hidden_size)
    ua, bu = linear(ks[2], ks[3], hidden_size, hidden_size)
    va, bv = linear(ks[4], ks[5], hidden_size, output_size)
    return wa, ba, ua, bu, va, bv


def reference(x, h, params):
    """Pure-JAX f32 mirror of the PyTorch forward (for correctness check)."""
    wa, ba, ua, bu, va, bv = params
    h3 = h[None, :, :]                       # unsqueeze(0) -> [1, N, H]
    a1 = x @ wa.T + ba                       # [N, H]
    a2 = h3 @ ua.T + bu                      # [1, N, H]
    t = jnp.tanh(a1 + a2)                    # [1, N, H]
    s = t @ va.T + bv                        # [1, N, 1]
    w = jax.nn.softmax(s, axis=1)            # softmax over N
    return jnp.sum(w * x, axis=1)            # [1, F]


if __name__ == "__main__":
    N = 8       # number of image/batch rows (PyTorch example: 32)
    F = 256     # cnn_feature_size (PyTorch example: 2048)
    H = 128     # hidden_size

    key = jax.random.PRNGKey(0)
    k_x, k_h, k_p = jax.random.split(key, 3)
    x = jax.random.normal(k_x, (N, F), jnp.float32)
    h = jax.random.normal(k_h, (N, H), jnp.float32)
    params = init_params(k_p, F, H, output_size=1)

    out = jax.block_until_ready(bahdanau_attention(x, h, params))
    ref = jax.block_until_ready(reference(x, h, params))

    assert out.shape == (1, F), out.shape
    # bf16 matmul inputs + approx reciprocal -> loosened tolerance vs f32 ref.
    assert jnp.allclose(out, ref, atol=3e-2, rtol=3e-2), (
        float(jnp.max(jnp.abs(out - ref))))

    print("KERNEL_OK")
</pallas_src>

<mosaic_0001>
module attributes {stable_mosaic.version = 11 : i64} {
  func.func @bahdanau_attention_kernel(%arg0: i32, %arg1: memref<8x128xbf16, #tpu.memory_space<vmem>>, %arg2: memref<128x128xbf16, #tpu.memory_space<vmem>>, %arg3: memref<1x128xf32, #tpu.memory_space<vmem>>, %arg4: memref<1x128xf32, #tpu.memory_space<vmem>>, %arg5: memref<8x256xbf16, #tpu.memory_space<vmem>>, %arg6: memref<1x256xf32, #tpu.memory_space<vmem>>, %arg7: memref<8x128xf32, #tpu.memory_space<vmem>>) attributes {dimension_semantics = [#tpu.dimension_semantics<arbitrary>], iteration_bounds = array<i64: 3>, scalar_prefetch = 0 : i64, scratch_operands = 1 : i64, tpu.core_type = #tpu.core_type<tc>, window_params = [{transform_indices = @transform_0, window_bounds = array<i64: 8, 128>}, {transform_indices = @transform_1, window_bounds = array<i64: 128, 128>}, {pipeline_mode = #tpu.pipeline_mode<synchronous>, transform_indices = @transform_2, window_bounds = array<i64: 1, 128>}, {pipeline_mode = #tpu.pipeline_mode<synchronous>, transform_indices = @transform_3, window_bounds = array<i64: 1, 128>}, {pipeline_mode = #tpu.pipeline_mode<synchronous>, transform_indices = @transform_4, window_bounds = array<i64: 8, 256>}, {pipeline_mode = #tpu.pipeline_mode<synchronous>, transform_indices = @transform_5, window_bounds = array<i64: 1, 256>}]} {
    %c0_i32 = arith.constant 0 : i32
    %0 = arith.cmpi eq, %arg0, %c0_i32 : i32
    %1 = arith.extui %0 : i1 to i32
    %c0_i32_0 = arith.constant 0 : i32
    %2 = arith.cmpi ne, %1, %c0_i32_0 : i32
    scf.if %2 {
      %cst_9 = arith.constant 0.000000e+00 : f32
      %12 = vector.broadcast %cst_9 : f32 to vector<8x128xf32>
      %c0_10 = arith.constant 0 : index
      %c0_11 = arith.constant 0 : index
      %13 = vector.load %arg7[%c0_10, %c0_11] : memref<8x128xf32, #tpu.memory_space<vmem>>, vector<8x128xf32>
      tpu.vector_store %arg7[%c0_10, %c0_11], %12 {strides = array<i32>} : memref<8x128xf32, #tpu.memory_space<vmem>>, vector<8x128xf32>,
    } else {
    }
    %c0 = arith.constant 0 : index
    %c0_1 = arith.constant 0 : index
    %3 = vector.load %arg7[%c0, %c0_1] : memref<8x128xf32, #tpu.memory_space<vmem>>, vector<8x128xf32>
    %c0_2 = arith.constant 0 : index
    %c0_3 = arith.constant 0 : index
    %4 = vector.load %arg1[%c0_2, %c0_3] : memref<8x128xbf16, #tpu.memory_space<vmem>>, vector<8x128xbf16>
    %c0_4 = arith.constant 0 : index
    %c0_5 = arith.constant 0 : index
    %5 = vector.load %arg2[%c0_4, %c0_5] : memref<128x128xbf16, #tpu.memory_space<vmem>>, vector<128x128xbf16>
    %cst = arith.constant dense<0.000000e+00> : vector<8x128xf32>
    %6 = tpu.matmul %4, %5, %cst {dimension_numbers = #tpu.dot_dimension_numbers<[1], [0], [0], [1], [0, 0, 1, 1], [], []>} : vector<8x128xbf16>, vector<128x128xbf16>, vector<8x128xf32> -> vector<8x128xf32>
    %7 = arith.addf %3, %6 : vector<8x128xf32>
    %c0_6 = arith.constant 0 : index
    %c0_7 = arith.constant 0 : index
    %8 = vector.load %arg7[%c0_6, %c0_7] : memref<8x128xf32, #tpu.memory_space<vmem>>, vector<8x128xf32>
    tpu.vector_store %arg7[%c0_6, %c0_7], %7 {strides = array<i32>} : memref<8x128xf32, #tpu.memory_space<vmem>>, vector<8x128xf32>,
    %c2_i32 = arith.constant 2 : i32
    %9 = arith.cmpi eq, %arg0, %c2_i32 : i32
    %10 = arith.extui %9 : i1 to i32
    %c0_i32_8 = arith.constant 0 : i32
    %11 = arith.cmpi ne, %10, %c0_i32_8 : i32
    scf.if %11 {
      %c0_9 = arith.constant 0 : index
      %c0_10 = arith.constant 0 : index
      %12 = vector.load %arg7[%c0_9, %c0_10] : memref<8x128xf32, #tpu.memory_space<vmem>>, vector<8x128xf32>
      %c0_11 = arith.constant 0 : index
      %c0_12 = arith.constant 0 : index
      %13 = vector.load %arg3[%c0_11, %c0_12] : memref<1x128xf32, #tpu.memory_space<vmem>>, vector<1x128xf32>
      %14 = vector.broadcast %13 : vector<1x128xf32> to vector<8x128xf32>
      %15 = arith.addf %12, %14 : vector<8x128xf32>
      %16 = math.tanh %15 : vector<8x128xf32>
      %c0_13 = arith.constant 0 : index
      %c0_14 = arith.constant 0 : index
      %17 = vector.load %arg4[%c0_13, %c0_14] : memref<1x128xf32, #tpu.memory_space<vmem>>, vector<1x128xf32>
      %cst_15 = arith.constant dense<0.000000e+00> : vector<1x8xf32>
      %18 = tpu.matmul %17, %16, %cst_15 {dimension_numbers = #tpu.dot_dimension_numbers<[1], [1], [0], [0], [0, 0, 1, 0], [], []>} : vector<1x128xf32>, vector<8x128xf32>, vector<1x8xf32> -> vector<1x8xf32>
      %cst_16 = arith.constant dense<0xFF800000> : vector<1xf32>
      %19 = vector.multi_reduction <maximumf>, %18, %cst_16 [1] : vector<1x8xf32> to vector<1xf32>
      %20 = vector.shape_cast %19 : vector<1xf32> to vector<1x1xf32>
      %21 = vector.broadcast %20 : vector<1x1xf32> to vector<1x8xf32>
      %22 = arith.subf %18, %21 : vector<1x8xf32>
      %23 = math.exp %22 : vector<1x8xf32>
      %cst_17 = arith.constant dense<0.000000e+00> : vector<1xf32>
      %24 = vector.multi_reduction <add>, %23, %cst_17 [1] : vector<1x8xf32> to vector<1xf32>
      %25 = vector.shape_cast %24 : vector<1xf32> to vector<1x1xf32>
      %26 = tpu.reciprocal %25 {approx = true} : vector<1x1xf32> -> vector<1x1xf32>
      %27 = arith.truncf %23 : vector<1x8xf32> to vector<1x8xbf16>
      %c0_18 = arith.constant 0 : index
      %c0_19 = arith.constant 0 : index
      %28 = vector.load %arg5[%c0_18, %c0_19] : memref<8x256xbf16, #tpu.memory_space<vmem>>, vector<8x256xbf16>
      %cst_20 = arith.constant dense<0.000000e+00> : vector<1x256xf32>
      %29 = tpu.matmul %27, %28, %cst_20 {dimension_numbers = #tpu.dot_dimension_numbers<[1], [0], [0], [1], [0, 0, 1, 1], [], []>} : vector<1x8xbf16>, vector<8x256xbf16>, vector<1x256xf32> -> vector<1x256xf32>
      %30 = vector.broadcast %26 : vector<1x1xf32> to vector<1x256xf32>
      %31 = arith.mulf %29, %30 : vector<1x256xf32>
      %c0_21 = arith.constant 0 : index
      %c0_22 = arith.constant 0 : index
      %32 = vector.load %arg6[%c0_21, %c0_22] : memref<1x256xf32, #tpu.memory_space<vmem>>, vector<1x256xf32>
      tpu.vector_store %arg6[%c0_21, %c0_22], %31 {strides = array<i32>} : memref<1x256xf32, #tpu.memory_space<vmem>>, vector<1x256xf32>,
    } else {
    }
    return
  }
  func.func @transform_0(%arg0: i32) -> (i32, i32) {
    %c0_i32 = arith.constant 0 : i32
    %c0_i32_0 = arith.constant 0 : i32
    return %c0_i32, %arg0 : i32, i32
  }
  func.func @transform_1(%arg0: i32) -> (i32, i32) {
    %c0_i32 = arith.constant 0 : i32
    %c0_i32_0 = arith.constant 0 : i32
    return %arg0, %c0_i32 : i32, i32
  }
  func.func @transform_2(%arg0: i32) -> (i32, i32) {
    %c0_i32 = arith.constant 0 : i32
    %c0_i32_0 = arith.constant 0 : i32
    %c0_i32_1 = arith.constant 0 : i32
    return %c0_i32, %c0_i32_0 : i32, i32
  }
  func.func @transform_3(%arg0: i32) -> (i32, i32) {
    %c0_i32 = arith.constant 0 : i32
    %c0_i32_0 = arith.constant 0 : i32
    %c0_i32_1 = arith.constant 0 : i32
    return %c0_i32, %c0_i32_0 : i32, i32
  }
  func.func @transform_4(%arg0: i32) -> (i32, i32) {
    %c0_i32 = arith.constant 0 : i32
    %c0_i32_0 = arith.constant 0 : i32
    %c0_i32_1 = arith.constant 0 : i32
    return %c0_i32, %c0_i32_0 : i32, i32
  }
  func.func @transform_5(%arg0: i32) -> (i32, i32) {
    %c0_i32 = arith.constant 0 : i32
    %c0_i32_0 = arith.constant 0 : i32
    %c0_i32_1 = arith.constant 0 : i32
    return %c0_i32, %c0_i32_0 : i32, i32
  }
}

</mosaic_0001>

<bundles_post_ra>
// kernel: tpu_custom_call.1
= control target key start
LH: loop header
LB: loop body
LE: loop exit
PB: predicated region body
PF: predicated region fallthrough
CT: control target
= control target key end

     0   :  { %10 = vsyncpa [#allocation4], 0  ;;  %s1158_s0 = inlined_call_operand.hbm [shape: bf16[8,384], index: 0, kind: input, shape index: {}]   ;;  %s1159_s1 = inlined_call_operand.hbm [shape: bf16[384,128], index: 1, kind: input, shape index: {}]   ;;  %s1160_s2 = inlined_call_operand.vmem [shape: f32[1,128], index: 2, kind: input, shape index: {}]   ;;  %s1161_s3 = inlined_call_operand.vmem [shape: f32[1,128], index: 3, kind: input, shape index: {}]   ;;  %s1162_s4 = inlined_call_operand.vmem [shape: bf16[8,256], index: 4, kind: input, shape index: {}]   ;;  %s1163_s5 = inlined_call_operand.hbm [shape: f32[1,256], index: 5, kind: output, shape index: {}]  }
   0x1   :  { %12 = vsyncpa [#allocation4 + $0x1], 0 }
   0x2   :  { %13 = vsyncpa [#allocation7], 0 }
   0x3   :  { %15 = vsyncpa [#allocation7 + $0x1], 0 }
   0x4   :  { %16 = vsyncpa [#allocation5], 0  ;;  %s958_s18 = smov 0   ;;  %s960_s19 = smov 0  }
   0x5   :  { %s962_s20 = smov 0   ;;  %s964_s21 = smov 0  }
   0x6 LB: > { %s977_s22 = sadd.s32 4294967295, %s914_s21   ;;  %s980_s23 = sadd.s32 1, %s914_s21   ;;  %s914_s21 = sphi %s964_s21, %s1174_s21   ;;  %s910_s20 = sphi %s962_s20, %s1173_s20   ;;  %s906_s19 = sphi %s960_s19, %s1172_s19   ;;  %s902_s18 = sphi %s958_s18, %s1171_s18  }
   0x7   : > { %s26_s24 = ssub.s32 %s914_s21, %s980_s23  ;;  %s29_s25 = sadd.s32 1, %s910_s20 }
   0x8   : > { %p27_p0 = scmp.eq.s32.totalorder %s26_s24, 0  ;;  %p36_p1 = scmp.ne.s32.totalorder %s910_s20, %s906_s19 }
   0x9   : > { %p37_p2 = scmp.eq.s32.totalorder %s914_s21, 0  ;;  %p42_p3 = scmp.ne.s32.totalorder %s906_s19, %s902_s18 }
   0xa   : > { %s990_s26 = scalar_select %p27_p0, %s910_s20, %s29_s25  }
   0xb   : > { %p38_p4 = por %p37_p2, %p36_p1  ;;  %p43_p5 = scmp.eq.s32.totalorder %s977_s22, 0 }
   0xc   : > { %p725_p6 = scmp.lt.s32.totalorder %s914_s21, 3  ;;  %s999_s28 = sand.u32 1, %s910_s20  }
   0xd   : > { %p994_p7 = por %p43_p5, %p42_p3  ;;  %s646_s29 = sshll.u32 %s999_s28, 2 }
   0xe   : > { %s647_s30 = sshll.u32 %s914_s21, 6  ;;  %s189_s9 = scalar_lea.vmem [#allocation3], %s646_s29 }
   0xf   : > { %s1165_s27 = scalar_select %p994_p7, 1, 0 }
  0x10   : > { %s1006_s8 = scalar_lea.hbm %s1158_s0, %s647_s30  ;;  %s196_s10 = sshll.u32 %s189_s9, 4  ;;  %s1008_s10 = int_to_ptr.vmem [resolvable:$true] %s196_s10 }
  0x11   : > { %p1010_p8 = pnand %p725_p6, %p38_p4  ;;  %s186_s12 = scalar_lea.sflag [#allocation4], %s999_s28 }
  0x12   : > { %s786_s13 = scalar_lea.hbm %s1006_s8, 64  ;;  %s791_s16 = scalar_lea.hbm %s1158_s0, 192 }
  0x13   : > { %p787_p11 = scmp.ne.s32.totalorder %s1006_s8, %s786_s13  ;;  %p788_p12 = pneg %p1010_p8 }
  0x14   : > { %p792_p1 = scmp.lt.u32.totalorder %s1006_s8, %s1158_s0  ;;  %p793_p2 = scmp.lt.u32.totalorder %s791_s16, %s786_s13 }
  0x15   : > { %p789_p13 = pnand %p788_p12, %p787_p11  ;;  %p795_p4 = scmp.lt.u32.totalorder %s786_s13, %s1006_s8 }
  0x16   : > { %p794_p3 = por %p793_p2, %p792_p1 }
  0x17   : > { %p790_p0 = pneg %p789_p13 }
  0x18   : > { %p796_p5 = por %p795_p4, %p794_p3 }
  0x1a   : > { %p797_p6 = pnand %p796_p5, %p790_p0 }
  0x1c   : > { %800 = shalt.err (!%p797_p6)
}
  0x1d   : > { %s801_s24 = scalar_lea.vmem %s1008_s10, 64  ;;  %s916_s25 = smov [#allocation3]  }
  0x1e   : > { %p802_p11 = scmp.ne.s32.totalorder %s1008_s10, %s801_s24  ;;  %s806_s29 = sshll.u32 %s916_s25, 4  ;;  %s807_s29 = int_to_ptr.vmem [resolvable:$false] %s806_s29 }
  0x1f   : > { %s808_s30 = scalar_lea.vmem %s807_s29, 128  ;;  %p809_p10 = scmp.lt.s32.totalorder %s1008_s10, %s807_s29 }
  0x20   : > { %p804_p13 = pnand %p802_p11, %p788_p12  ;;  %p810_p1 = scmp.lt.s32.totalorder %s808_s30, %s801_s24 }
  0x22   : > { %p805_p9 = pneg %p804_p13  ;;  %p811_p2 = por %p810_p1, %p809_p10 }
  0x24   : > { %p812_p3 = pnand %p811_p2, %p805_p9 }
  0x26   : > { %815 = shalt.err (!%p812_p3)
}
  0x27   : > { %721 = dma.hbm_to_vmem [thread:$0]  (!%p1010_p8), %s1006_s8, 64, %s1008_s10, %s186_s12  }
  0x28   : > { %p1167_p0 = scmp.lt.s32.totalorder %s914_s21, 4  ;;  %p1168_p4 = scmp.ge.s32.totalorder %s914_s21, 1 }
  0x29   : > { %s648_s7 = sshll.u32 %s999_s28, 6  ;;  %s673_s9 = sshll.u32 %s914_s21, 10 }
  0x2a   : > { %p1046_p5 = pnand %p1168_p4, %p1167_p0  ;;  %s1055_s15 = scalar_lea.hbm %s1159_s1, %s673_s9 }
  0x2b   : > { %s207_s16 = scalar_lea.vmem [#allocation6], %s648_s7  ;;  %s204_s8 = scalar_lea.sflag [#allocation7], %s999_s28 }
  0x2c   : > { %s214_s17 = sshll.u32 %s207_s16, 4  ;;  %s816_s10 = scalar_lea.hbm %s1055_s15, 1024  ;;  %s1057_s17 = int_to_ptr.vmem [resolvable:$true] %s214_s17 }
  0x2d   : > { %p817_p9 = scmp.ne.s32.totalorder %s1055_s15, %s816_s10  ;;  %s821_s18 = scalar_lea.hbm %s1159_s1, 3072 }
  0x2e   : > { %p822_p11 = scmp.lt.u32.totalorder %s1055_s15, %s1159_s1  ;;  %p823_p13 = scmp.lt.u32.totalorder %s821_s18, %s816_s10 }
  0x2f   : > { %p819_p10 = pnand %p817_p9, %p788_p12  ;;  %p825_p2 = scmp.lt.u32.totalorder %s816_s10, %s1055_s15 }
  0x30   : > { %p824_p1 = por %p823_p13, %p822_p11 }
  0x31   : > { %p820_p6 = pneg %p819_p10 }
  0x32   : > { %p826_p3 = por %p825_p2, %p824_p1 }
  0x34   : > { %p827_p0 = pnand %p826_p3, %p820_p6 }
  0x36   : > { %830 = shalt.err (!%p827_p0)
}
  0x37   : > { %s831_s29 = scalar_lea.vmem %s1057_s17, 1024  ;;  %s917_s30 = smov [#allocation6]  }
  0x38   : > { %p832_p4 = scmp.ne.s32.totalorder %s1057_s17, %s831_s29  ;;  %s836_s7 = sshll.u32 %s917_s30, 4  ;;  %s837_s7 = int_to_ptr.vmem [resolvable:$false] %s836_s7 }
  0x39   : > { %s838_s9 = scalar_lea.vmem %s837_s7, 2048  ;;  %p839_p7 = scmp.lt.s32.totalorder %s1057_s17, %s837_s7 }
  0x3a   : > { %p834_p9 = pnand %p832_p4, %p788_p12  ;;  %p840_p11 = scmp.lt.s32.totalorder %s838_s9, %s831_s29 }
  0x3c   : > { %p835_p10 = pneg %p834_p9  ;;  %p841_p13 = por %p840_p11, %p839_p7 }
  0x3e   : > { %p842_p1 = pnand %p841_p13, %p835_p10 }
  0x40   : > { %845 = shalt.err (!%p842_p1)
}
  0x41   : > { %s918_s13 = smov 64   ;;  %s919_s14 = smov 4  }
  0x42   : > { %724 = dma.hbm_to_vmem [thread:$0]  (!%p1010_p8), %s1055_s15, 1024, %s1057_s17, %s204_s8, %s918_s13, %s918_s13, %s919_s14  }
  0x43   : > { %226 = sbr.rel (%p1046_p5) target bundleno = 977 (0x3d1), region = 40  ;;  %s228_s16 = sand.u32 (!%p1046_p5), 1, %s906_s19  }
  0x44   : > { %s652_s10 = sshll.u32 (!%p1046_p5), %s228_s16, 2  ;;  %s229_s21 = scalar_lea.sflag (!%p1046_p5), [#allocation4], %s228_s16 }
  0x45   : > { %s1088_s12 = scalar_lea.vmem (!%p1046_p5), [#allocation3], %s652_s10  ;;  %p1170_p7 = scmp.ne.s32.totalorder (!%p1046_p5), %s1165_s27, 0 }
  0x4a   : > { %889 = dma.done.wait (%p1170_p7), %s229_s21, 64  }
  0x4b   : > { %891 = vsyncadd (%p1170_p7), %s229_s21, 4294967232  ;;  %s653_s18 = sshll.u32 %s228_s16, 6  ;;  %s238_s11 = scalar_lea.sflag [#allocation7], %s228_s16 }
  0x4c   : > { %s1094_s28 = scalar_lea.vmem [#allocation6], %s653_s18 }
  0x4d   : > { %893 = dma.done.wait (%p1170_p7), %s238_s11, 1024  }
  0x4e   : > { %895 = vsyncadd (%p1170_p7), %s238_s11, 4294966272  ;;  %p654_p8 = scmp.ne.s32.totalorder %s977_s22, 0 }
  0x4f   : > { %v920_v0 = vmov (!%p654_p8), 0.0  }
  0x50   : > { %273 = sbr.rel (%p654_p8) target bundleno = 87 (0x57), region = 52  ;;  %274 = vst [vmem:[#allocation2] sm:$0xff] (!%p654_p8), %v920_v0 }
  0x57 PF: > { %v770_v1 = vld [vmem:[%s1094_s28] sm:$0xff]   ;;  %v921_v2 = vmov 0.0   ;;  %v771_v3 = vld [vmem:[%s1094_s28 + $0x8] sm:$0xff]   ;;  %vm922_vm0 = vmmov 0   ;;  %v772_v4 = vld [vmem:[%s1094_s28 + $0x10] sm:$0xff]   ;;  %p663_p12 = scmp.ne.s32.totalorder %s977_s22, 2 }
  0x58   : > { %685 = vmatprep.subr.bf16.mxu0 %v921_v2  ;;  %701 = vmatprep.mubr.msk.bf16.mxu0 %vm922_vm0, %v921_v2  ;;  %v773_v5 = vld [vmem:[%s1094_s28 + $0x18] sm:$0xff]   ;;  %v774_v6 = vld [vmem:[%s1094_s28 + $0x20] sm:$0xff]   ;;  %v775_v7 = vld [vmem:[%s1094_s28 + $0x28] sm:$0xff]   ;;  %v923_v19 = vmov (!%p663_p12), 0.0   ;;  %vm924_vm1 = vmmov (!%p663_p12), 0   ;;  %vm468_vm2 = vcmask (!%p663_p12), 57344   ;;  %v546_v40 = vlaneseq (!%p663_p12) }
  0x59   : > { %686 = vmatpush3.bf16.msra.mxu0 %v770_v1  ;;  %v776_v8 = vld [vmem:[%s1094_s28 + $0x30] sm:$0xff]   ;;  %v777_v9 = vld [vmem:[%s1094_s28 + $0x38] sm:$0xff]   ;;  %vm490_vm3 = vcmask (!%p663_p12), 1043456   ;;  %v925_v29 = vmov (!%p663_p12), 0   ;;  %vm486_vm4 = vcmask (!%p663_p12), 64512  }
  0x5a   : > { %687 = vmatprep.subr.bf16.mxu0 %v921_v2  ;;  %v276_v10 = vld [vmem:[%s1088_s12] sm:$0xf]  ;;  %v275_v11 = vld [vmem:[#allocation2] sm:$0xff]  ;;  %529 = vmatprep.mubr.bf16.mxu1 (!%p663_p12), %v925_v29  ;;  %v926_v38 = vmov (!%p663_p12), 1966171168   ;;  %v547_v42 = vshrl.u32 (!%p663_p12), %v546_v40, 7 }
  0x5b   : > { %v664_v18 = vld [vmem:[%s1160_s2] ss:$0 sm:$0xff] (!%p663_p12)  ;;  %v544_v39 = vunpack.c.l.s4 (!%p663_p12), %v926_v38  ;;  %vm560_vm5 = vcmp.lt.s32.totalorder (!%p663_p12), %v546_v40, 256 }
  0x5c   : > { %v397_v22 = vld [vmem:[%s1161_s3] sm:$0x1] (!%p663_p12) }
  0x5d   : > { %688 = vmatpush3.bf16.msra.mxu0 %v771_v3  ;;  %v480_v26 = vld [vmem:[%s1162_s4] sm:$0xff] (!%p663_p12)  ;;  %v545_v41 = vunpack.c.0.s8 (!%p663_p12), %v544_v39 }
  0x5e   : > { %689 = vmatprep.subr.bf16.mxu0 %v921_v2  ;;  %v666_v27 = vcombine.high (!%p663_p12), %v480_v26, %v480_v26  ;;  %v665_v28 = vcombine.low (!%p663_p12), %v480_v26, %v480_v26 }
  0x5f   : > { %v548_v48 = vsub.s32 (!%p663_p12), %v545_v41, %v547_v42 }
  0x60   : > { %667 = vmatprep.subr.msk.bf16.mxu1 (!%p663_p12), %vm490_vm3, %v666_v27  ;;  %v492_v30 = vsel (!%p663_p12), %vm490_vm3, %v665_v28, 0 }
  0x61   : > { %690 = vmatpush3.bf16.msra.mxu0 %v772_v4  ;;  %498 = vmatpush1.bf16.msra.mxu1 (!%p663_p12), %v492_v30 }
  0x62   : > { %691 = vmatprep.subr.bf16.mxu0 %v921_v2 }
  0x65   : > { %692 = vmatpush3.bf16.msra.mxu0 %v773_v5 }
  0x66   : > { %693 = vmatprep.subr.bf16.mxu0 %v921_v2 }
  0x69   : > { %694 = vmatpush3.bf16.msra.mxu0 %v774_v6 }
  0x6a   : > { %695 = vmatprep.subr.bf16.mxu0 %v921_v2 }
  0x6d   : > { %696 = vmatpush3.bf16.msra.mxu0 %v775_v7 }
  0x6e   : > { %697 = vmatprep.subr.bf16.mxu0 %v921_v2 }
  0x71   : > { %698 = vmatpush3.bf16.msra.mxu0 %v776_v8 }
  0x72   : > { %699 = vmatprep.subr.bf16.mxu0 %v921_v2 }
  0x75   : > { %700 = vmatpush3.bf16.msra.mxu0 %v777_v9 }
  0x76   : > { %705 = vmatprep.subr.mxu0 (!%p663_p12), %v923_v19 }
  0x78   : > { %702 = vmatmul.mubr.bf16.vlgmr.msra.gmra.mrb[0].mxu0 %v276_v10 }
  0x79   : > { %707 = vmatprep.mubr.msk.f32.mxu0 (!%p663_p12), %vm924_vm1, %v923_v19 }
 0x148   : > { %386 = sbr.rel (%p663_p12) target bundleno = 952 (0x3b8), region = 56 }
 0x14b   : > { %v375_v12 = vpop.f32.mrb[0].mxu0 }
 0x14c   : > { %v381_v13 = vadd.f32 %v375_v12, %v275_v11  ;;  %v703_v14 = vpop.f32.mrb[1].mxu0 }
 0x14d   : > { %v378_v15 = vpop.f32.mrb[2].mxu0 }
 0x14e   : > { %382 = vst [vmem:[#allocation2] sm:$0xff] %v381_v13  ;;  %v704_v16 = vpop.f32.mrb[3].mxu0 }
 0x155   : > { %v387_v17 = vld [vmem:[#allocation2] sm:$0xff] }
 0x156   : > { %v395_v20 = vadd.f32 %v664_v18, %v387_v17 }
 0x158   : > { %780 = vtanh.f32 %v395_v20 }
 0x162   : > { %v781_v21 = vpop.eup %780 }
 0x163   : > { %706 = vmatpush3.xpose.msra.mxu0 %v781_v21 }
 0x166   : > { %708 = vmatmul.mubr.f32.vlgmr.msra.gmra.mrb[0].mxu0 %v397_v22 }
 0x239   : > { %v464_v23 = vpop.f32.mrb[0].mxu0 }
 0x23a   : > { %v709_v24 = vpop.f32.mrb[1].mxu0  ;;  %v469_v25 = vsel %vm468_vm2, %v464_v23, -inf }
 0x23b   : > { %470 = vmax.xlane.f32.xlu0 %v469_v25 }
 0x2c8   : > { %v471_v31 = vpop.xlane.xlu0 %470 }
 0x2c9   : > { %v472_v32 = vsub.f32 %v464_v23, %v471_v31 }
 0x2cb   : > { %v473_v33 = vmul.f32 1.442695, %v472_v32 }
 0x2cd   : > { %782 = vpow2.f32 %v473_v33 }
 0x2d7   : > { %v783_v34 = vpop.eup %782 }
 0x2d8   : > { %v475_v35 = vsel %vm468_vm2, %v783_v34, 0.0  ;;  %v479_v36 = vpack.c.bf16 %v783_v34, %v783_v34 }
 0x2d9   : > { %476 = vadd.xlane.f32.xlu0 %v475_v35 }
 0x2da   : > { %668 = vmatmul.mubr.msk.bf16.vlgmr.msra.gmra.mrb[0].mxu1 %vm486_vm4, %v479_v36 }
 0x366   : > { %v477_v37 = vpop.xlane.xlu0 %476 }
 0x367   : > { %784 = vrcp.f32 %v477_v37 }
 0x371   : > { %v785_v43 = vpop.eup %784 }
 0x3ad   : > { %v531_v44 = vpop.f32.mrb[0].mxu1 }
 0x3ae   : > { %v538_v45 = vmul.f32 %v785_v43, %v531_v44  ;;  %v533_v46 = vpop.f32.mrb[1].mxu1 }
 0x3af   : > { %v539_v47 = vmul.f32 %v785_v43, %v533_v46  ;;  %v535_v49 = vpop.f32.mrb[2].mxu1 }
 0x3b0   : > { %v536_v50 = vpop.f32.mrb[3].mxu1 }
 0x3b1   : > { %v542_v51 = vcombine.low %v538_v45, %v539_v47 }
 0x3b3   : > { %v549_v52 = vrot.slane %v542_v51, %v548_v48 }
 0x3b5   : > { %v556_v53 = vrot.slane %v549_v52, %v548_v48 }
 0x3b7   : > { %562 = vst.msk [vmem:[#allocation8] sm:$0x3] %vm560_vm5, %v556_v53 }
 0x3b8 PF: > { %p726_p5 = scmp.eq.s32.totalorder %s977_s22, 2  ;;  %s927_s25 = smov [#allocation8]  }
 0x3b9   : > { %s570_s29 = sshll.u32 %s927_s25, 4  ;;  %s571_s29 = int_to_ptr.vmem [resolvable:$true] %s570_s29 }
 0x3ba   : > { %s846_s30 = scalar_lea.vmem %s571_s29, 32  ;;  %p853_p0 = scmp.lt.s32.totalorder %s571_s29, %s571_s29 }
 0x3bb   : > { %p847_p6 = scmp.ne.s32.totalorder %s571_s29, %s846_s30  ;;  %p854_p4 = scmp.lt.s32.totalorder %s846_s30, %s846_s30 }
 0x3bd   : > { %p848_p2 = pnand %p847_p6, %p726_p5  ;;  %p855_p9 = por %p854_p4, %p853_p0 }
 0x3bf   : > { %p849_p3 = pneg %p848_p2 }
 0x3c1   : > { %p856_p10 = pnand %p855_p9, %p849_p3 }
 0x3c3   : > { %859 = shalt.err (!%p856_p10)
}
 0x3c4   : > { %s860_s13 = scalar_lea.hbm %s1163_s5, 32 }
 0x3c5   : > { %p861_p11 = scmp.ne.s32.totalorder %s1163_s5, %s860_s13  ;;  %p866_p7 = scmp.lt.u32.totalorder %s860_s13, %s1163_s5 }
 0x3c7   : > { %p862_p13 = pnand %p861_p11, %p726_p5 }
 0x3c9   : > { %p863_p1 = pneg %p862_p13 }
 0x3cb   : > { %p868_p8 = pnand %p866_p7, %p863_p1 }
 0x3cd   : > { %871 = shalt.err (!%p868_p8)
}
 0x3ce   : > { %715 = dma.vmem_to_hbm [thread:$0]  (%p726_p5), %s571_s29, 32, %s1163_s5, [#allocation5]  }
 0x3cf   : > { %897 = dma.done.wait (%p726_p5), [#allocation5], 32  }
 0x3d0   : > { %899 = vsyncadd (%p726_p5), [#allocation5], 4294967264 }
 0x3d1 PF: > { %p19_p12 = scmp.ge.s32.totalorder %s980_s23, 5   ;;  %s1171_s18 = smov %s906_s19 }
 0x3d2   : > { %s1172_s19 = smov %s910_s20  ;;  %s1173_s20 = smov %s990_s26 }
 0x3d3   : > { %s1174_s21 = smov %s980_s23  ;;  %21 = sbr.rel (!%p19_p12) target bundleno = 6 (0x6), region = 98 }
 0x3da   :  { %583 = vsyncpa [#allocation4], 1 }
 0x3db   :  { %585 = vsyncpa [#allocation4 + $0x1], 1 }
 0x3dc   :  { %586 = vsyncpa [#allocation7], 1 }
 0x3dd   :  { %588 = vsyncpa [#allocation7 + $0x1], 1 }
 0x3de   :  { %589 = vsyncpa [#allocation5], 1 }
 0x3df   :  { %591 = vsyncpa [#allocation5 + $0x1], 1 }

</bundles_post_ra>
